<compile_context>
chip_gen: v5e
topology: v5e:2x2
jax: 0.10.0
libtpu: 0.0.40
codegen_flags: <defaults>
</compile_context>

<pallas_src>
import jax
import jax.numpy as jnp
from jax.experimental import pallas as pl
from jax.experimental.pallas import tpu as pltpu

_LANE = 128          # lane width: last-dim alignment target
_ROW_ALIGN = 16      # bf16 sublane packing: batch-tile row alignment


def _round_up(n, m):
    return ((n + m - 1) // m) * m


def _tpu_generation():
    """Static (trace-time) per-generation tuning knobs, keyed off device_kind."""
    kind = jax.devices()[0].device_kind.lower()
    if "v7" in kind or "7x" in kind:
        # 2 TensorCores/chip, 64 MiB VMEM/TC, 32 MiB default scoped limit, bf16 VPU.
        return dict(cores=2, scoped_default=32 << 20, vmem_cap=48 << 20,
                    tile_budget=40 << 20, bf16_act=True)
    if "v6" in kind:
        # 1 TC, 128 MiB VMEM, 32 MiB default scoped limit, bf16 VPU.
        return dict(cores=1, scoped_default=32 << 20, vmem_cap=100 << 20,
                    tile_budget=80 << 20, bf16_act=True)
    if "v5e" in kind or "v5 lite" in kind or "v5lite" in kind:
        # 1 TC, 128 MiB VMEM, 16 MiB default scoped limit, no bf16 VPU -> f32 acts.
        return dict(cores=1, scoped_default=16 << 20, vmem_cap=100 << 20,
                    tile_budget=80 << 20, bf16_act=False)
    # Unknown generation (v4/v5p/...): conservative single-core defaults.
    return dict(cores=1, scoped_default=16 << 20, vmem_cap=48 << 20,
                tile_budget=32 << 20, bf16_act=False)


def _pick_batch_tile(batch, requested, num_cores, vmem_fn, budget):
    """16-row aligned batch tile; split for >=num_cores grid steps only on multi-TC
    chips (v7x); shrink (keeping 16-row alignment) until the per-step VMEM estimate
    fits the generation's tile budget."""
    bt = min(requested, _round_up(batch, _ROW_ALIGN))
    if num_cores > 1:
        per_core = max(_ROW_ALIGN, _round_up(pl.cdiv(batch, num_cores), _ROW_ALIGN))
        bt = min(bt, per_core)
    bt = max(_ROW_ALIGN, _round_up(bt, _ROW_ALIGN))
    while bt > _ROW_ALIGN and vmem_fn(bt) > budget:
        bt = max(_ROW_ALIGN, _round_up(bt // 2, _ROW_ALIGN))
    return bt


def _make_ae_kernel(num_layers, act_dtype):
    """Fused MLP-autoencoder forward for one (bt, d_in) bf16 batch tile.

    Hidden layers: bf16 MXU matmul -> f32 accumulate -> bias + ReLU in `act_dtype`
    (bf16 on v6e/v7x, f32 on v5e). Final layer: bias + ReLU in f32 for the store.
    """
    def kernel(*refs):
        x_ref, out_ref = refs[0], refs[-1]
        wb = refs[1:-1]

        h = x_ref[...]                                    # bf16 batch tile
        for i in range(num_layers - 1):
            w_ref, b_ref = wb[2 * i], wb[2 * i + 1]
            acc = jnp.dot(h.astype(jnp.bfloat16), w_ref[...],
                          preferred_element_type=jnp.float32)
            h = jnp.maximum(acc.astype(act_dtype) + b_ref[...].astype(act_dtype), 0.0)

        w_ref, b_ref = wb[-2], wb[-1]
        acc = jnp.dot(h.astype(jnp.bfloat16), w_ref[...],
                      preferred_element_type=jnp.float32)
        out_ref[...] = jnp.maximum(acc + b_ref[...], 0.0).astype(out_ref.dtype)

    return kernel


def inner_autoencoder_forward(x, prepared, *, batch_tile=1024):
    """x: (B, F) float. prepared: lane-padded, BN-folded parameters (see prepare_params)."""
    B, F = x.shape
    if F != prepared["n_features"]:
        raise ValueError(f"expected {prepared['n_features']} features, got {F}")

    num_layers = prepared["num_layers"]
    padded = prepared["dims_padded"]
    d_in, d_out = padded[0], padded[-1]

    gen = _tpu_generation()
    act_dtype = jnp.bfloat16 if gen["bf16_act"] else jnp.float32

    weight_args = []
    for i in range(num_layers):
        weight_args += [prepared[f"w{i}"], prepared[f"b{i}"]]
    weight_bytes = sum(a.size * a.dtype.itemsize for a in weight_args)
    max_w = max(padded)

    def vmem_bytes(bt):
        # double-buffered bf16 x tile + double-buffered f32 out tile
        # + double-buffered (tiny) weights + f32 accumulator / activation temps.
        return (2 * bt * d_in * 2 + 2 * bt * d_out * 4
                + 2 * weight_bytes + 4 * bt * max_w * 4)

    bt = _pick_batch_tile(B, batch_tile, gen["cores"], vmem_bytes, gen["tile_budget"])
    B_pad = _round_up(B, bt)
    grid = (B_pad // bt,)

    # One fused prep op: bf16 cast + lane-pad of feature columns + at most one extra
    # batch tile appended for the ragged tail. When F is already a multiple of 128 and
    # B a multiple of bt this is purely the dtype cast (and a no-op for bf16 inputs).
    if B_pad == B and d_in == F and x.dtype == jnp.bfloat16:
        x_in = x
    else:
        x_in = jnp.pad(x.astype(jnp.bfloat16), ((0, B_pad - B), (0, d_in - F)))

    # Advisory cost estimate for XLA's scheduler (padded dims = what the MXU does).
    flops = int(sum(2 * B_pad * padded[i] * padded[i + 1] for i in range(num_layers)))
    bytes_accessed = int(x_in.size * 2 + B_pad * d_out * 4 + weight_bytes)
    cost = pl.CostEstimate(flops=flops, transcendentals=0,
                           bytes_accessed=bytes_accessed)

    # Generation-aware scoped-VMEM limit: only raise it past the default when needed,
    # and never past the per-generation cap (v7x has only 64 MiB/TC).
    est = vmem_bytes(bt)
    vmem_limit = None
    if est > gen["scoped_default"]:
        vmem_limit = int(min(_round_up(est * 3 // 2, 1 << 20), gen["vmem_cap"]))

    in_specs = [pl.BlockSpec((bt, d_in), lambda i: (i, 0))]
    for a in weight_args:
        in_specs.append(pl.BlockSpec(a.shape, lambda i: (0, 0)))   # constant blocks

    out = pl.pallas_call(
        _make_ae_kernel(num_layers, act_dtype),
        out_shape=jax.ShapeDtypeStruct((B_pad, d_out), jnp.float32),
        grid_spec=pltpu.PrefetchScalarGridSpec(
            num_scalar_prefetch=0,
            grid=grid,
            in_specs=in_specs,
            out_specs=pl.BlockSpec((bt, d_out), lambda i: (i, 0)),
        ),
        compiler_params=pltpu.CompilerParams(
            dimension_semantics=("parallel",),
            vmem_limit_bytes=vmem_limit),
        cost_estimate=cost,
    )(x_in, *weight_args)

    # Slice padded batch rows and padded (exactly-zero) feature lanes back off.
    return out[:B, :F]


def make_params(key, n_features, hidden_neurons=(128, 64), eps=1e-5):
    """Deterministic synthetic parameters with eval-mode BatchNorm folded into Linear.

    Layer chain (matches the PyTorch module): encoder F->128->64, decoder 64->128->F;
    BN on every layer except the final decoder layer.
    """
    enc = [n_features, *hidden_neurons]
    chain = enc + enc[-2::-1]                       # [F, 128, 64, 128, F]
    n_enc = len(enc) - 1
    n_dec = len(chain) - 1 - n_enc
    has_bn = [True] * n_enc + [True] * (n_dec - 1) + [False]

    params = {"dims": chain}
    keys = jax.random.split(key, (len(chain) - 1) * 6)
    ki = 0
    for idx in range(len(chain) - 1):
        din, dout = chain[idx], chain[idx + 1]
        bound = float(din) ** -0.5
        W = jax.random.uniform(keys[ki], (din, dout), jnp.float32, -bound, bound); ki += 1
        b = jax.random.uniform(keys[ki], (dout,), jnp.float32, -bound, bound); ki += 1
        if has_bn[idx]:
            # Synthetic (non-trivial) eval-mode BN stats and affine params, folded in.
            gamma = 1.0 + 0.1 * jax.random.normal(keys[ki], (dout,), jnp.float32); ki += 1
            beta = 0.1 * jax.random.normal(keys[ki], (dout,), jnp.float32); ki += 1
            rmean = 0.1 * jax.random.normal(keys[ki], (dout,), jnp.float32); ki += 1
            rvar = 1.0 + 0.1 * jax.random.uniform(keys[ki], (dout,), jnp.float32); ki += 1
            scale = gamma / jnp.sqrt(rvar + eps)
            W = W * scale[None, :]
            b = (b - rmean) * scale + beta
        else:
            ki += 4
        params[f"w{idx}"] = W                        # (din, dout) f32, BN folded
        params[f"b{idx}"] = b                        # (dout,)    f32, BN folded
    return params


def prepare_params(params):
    """Zero-pad every feature/hidden dim to a multiple of 128 lanes and cast weights
    to bf16 (MXU-native). Biases are zero in padded lanes so padded columns stay
    exactly zero through bias-add + ReLU (results identical after slicing)."""
    dims = params["dims"]
    padded = [_round_up(d, _LANE) for d in dims]
    prepared = {"n_features": dims[0], "dims_padded": padded,
                "num_layers": len(dims) - 1}
    for i in range(len(dims) - 1):
        din, dout = dims[i], dims[i + 1]
        pin, pout = padded[i], padded[i + 1]
        Wp = jnp.zeros((pin, pout), jnp.float32).at[:din, :dout].set(params[f"w{i}"])
        bp = jnp.zeros((pout,), jnp.float32).at[:dout].set(params[f"b{i}"])
        prepared[f"w{i}"] = Wp.astype(jnp.bfloat16)   # bf16 weights, zero-padded
        prepared[f"b{i}"] = bp.reshape(1, pout)       # f32 biases, zero in padded lanes
    return prepared


def _reference_forward(x, prepared, act_dtype):
    """Pure-JAX reference matching the kernel's bf16-matmul / f32-accumulate path
    (intentional ~1e-2 relative deviation from PyTorch's f32 forward)."""
    F = prepared["n_features"]
    d_in = prepared["dims_padded"][0]
    n = prepared["num_layers"]
    h = jnp.pad(x.astype(jnp.bfloat16), ((0, 0), (0, d_in - F)))
    for i in range(n - 1):
        acc = jnp.dot(h.astype(jnp.bfloat16), prepared[f"w{i}"],
                      preferred_element_type=jnp.float32)
        h = jnp.maximum(acc.astype(act_dtype) + prepared[f"b{i}"].astype(act_dtype), 0.0)
    acc = jnp.dot(h.astype(jnp.bfloat16), prepared[f"w{n-1}"],
                  preferred_element_type=jnp.float32)
    out = jnp.maximum(acc + prepared[f"b{n-1}"], 0.0)
    return out[:, :F]


if __name__ == "__main__":
    key = jax.random.PRNGKey(0)
    kx, kp = jax.random.split(key)

    B, F = 16, 32                      # small shapes: batch=16, n_features=32
    x = jax.random.normal(kx, (B, F), jnp.float32)
    params = make_params(kp, F, hidden_neurons=(128, 64))
    prepared = prepare_params(params)

    act_dtype = jnp.bfloat16 if _tpu_generation()["bf16_act"] else jnp.float32

    out = jax.block_until_ready(inner_autoencoder_forward(x, prepared))
    ref = _reference_forward(x, prepared, act_dtype)
    assert out.shape == (B, F)
    assert jnp.allclose(out, ref, atol=5e-3, rtol=5e-3), "mismatch vs JAX reference"

    # Ragged batch size exercises the "at most one appended tile" padding path.
    B2 = 10
    x2 = jax.random.normal(kx, (B2, F), jnp.float32)
    out2 = jax.block_until_ready(inner_autoencoder_forward(x2, prepared))
    ref2 = _reference_forward(x2, prepared, act_dtype)
    assert out2.shape == (B2, F)
    assert jnp.allclose(out2, ref2, atol=5e-3, rtol=5e-3), "mismatch (ragged batch)"

    print("KERNEL_OK")
</pallas_src>

<mosaic_0001>
module attributes {stable_mosaic.version = 11 : i64} {
  func.func @kernel(%arg0: i32, %arg1: memref<16x128xbf16, #tpu.memory_space<vmem>>, %arg2: memref<128x128xbf16, #tpu.memory_space<vmem>>, %arg3: memref<1x128xf32, #tpu.memory_space<vmem>>, %arg4: memref<128x128xbf16, #tpu.memory_space<vmem>>, %arg5: memref<1x128xf32, #tpu.memory_space<vmem>>, %arg6: memref<128x128xbf16, #tpu.memory_space<vmem>>, %arg7: memref<1x128xf32, #tpu.memory_space<vmem>>, %arg8: memref<128x128xbf16, #tpu.memory_space<vmem>>, %arg9: memref<1x128xf32, #tpu.memory_space<vmem>>, %arg10: memref<16x128xf32, #tpu.memory_space<vmem>>) attributes {dimension_semantics = [#tpu.dimension_semantics<parallel>], iteration_bounds = array<i64: 1>, scalar_prefetch = 0 : i64, scratch_operands = 0 : i64, tpu.core_type = #tpu.core_type<tc>, window_params = [{transform_indices = @transform_0, window_bounds = array<i64: 16, 128>}, {pipeline_mode = #tpu.pipeline_mode<synchronous>, transform_indices = @transform_1, window_bounds = array<i64: 128, 128>}, {pipeline_mode = #tpu.pipeline_mode<synchronous>, transform_indices = @transform_2, window_bounds = array<i64: 1, 128>}, {pipeline_mode = #tpu.pipeline_mode<synchronous>, transform_indices = @transform_3, window_bounds = array<i64: 128, 128>}, {pipeline_mode = #tpu.pipeline_mode<synchronous>, transform_indices = @transform_4, window_bounds = array<i64: 1, 128>}, {pipeline_mode = #tpu.pipeline_mode<synchronous>, transform_indices = @transform_5, window_bounds = array<i64: 128, 128>}, {pipeline_mode = #tpu.pipeline_mode<synchronous>, transform_indices = @transform_6, window_bounds = array<i64: 1, 128>}, {pipeline_mode = #tpu.pipeline_mode<synchronous>, transform_indices = @transform_7, window_bounds = array<i64: 128, 128>}, {pipeline_mode = #tpu.pipeline_mode<synchronous>, transform_indices = @transform_8, window_bounds = array<i64: 1, 128>}, {transform_indices = @transform_9, window_bounds = array<i64: 16, 128>}]} {
    %c0 = arith.constant 0 : index
    %c0_0 = arith.constant 0 : index
    %0 = vector.load %arg1[%c0, %c0_0] : memref<16x128xbf16, #tpu.memory_space<vmem>>, vector<16x128xbf16>
    %c0_1 = arith.constant 0 : index
    %c0_2 = arith.constant 0 : index
    %1 = vector.load %arg2[%c0_1, %c0_2] : memref<128x128xbf16, #tpu.memory_space<vmem>>, vector<128x128xbf16>
    %cst = arith.constant dense<0.000000e+00> : vector<16x128xf32>
    %2 = tpu.matmul %0, %1, %cst {dimension_numbers = #tpu.dot_dimension_numbers<[1], [0], [0], [1], [0, 0, 1, 1], [], []>} : vector<16x128xbf16>, vector<128x128xbf16>, vector<16x128xf32> -> vector<16x128xf32>
    %c0_3 = arith.constant 0 : index
    %c0_4 = arith.constant 0 : index
    %3 = vector.load %arg3[%c0_3, %c0_4] : memref<1x128xf32, #tpu.memory_space<vmem>>, vector<1x128xf32>
    %4 = vector.broadcast %3 : vector<1x128xf32> to vector<16x128xf32>
    %5 = arith.addf %2, %4 : vector<16x128xf32>
    %cst_5 = arith.constant 0.000000e+00 : f32
    %6 = vector.broadcast %cst_5 : f32 to vector<16x128xf32>
    %7 = arith.maximumf %5, %6 : vector<16x128xf32>
    %8 = arith.truncf %7 : vector<16x128xf32> to vector<16x128xbf16>
    %c0_6 = arith.constant 0 : index
    %c0_7 = arith.constant 0 : index
    %9 = vector.load %arg4[%c0_6, %c0_7] : memref<128x128xbf16, #tpu.memory_space<vmem>>, vector<128x128xbf16>
    %cst_8 = arith.constant dense<0.000000e+00> : vector<16x128xf32>
    %10 = tpu.matmul %8, %9, %cst_8 {dimension_numbers = #tpu.dot_dimension_numbers<[1], [0], [0], [1], [0, 0, 1, 1], [], []>} : vector<16x128xbf16>, vector<128x128xbf16>, vector<16x128xf32> -> vector<16x128xf32>
    %c0_9 = arith.constant 0 : index
    %c0_10 = arith.constant 0 : index
    %11 = vector.load %arg5[%c0_9, %c0_10] : memref<1x128xf32, #tpu.memory_space<vmem>>, vector<1x128xf32>
    %12 = vector.broadcast %11 : vector<1x128xf32> to vector<16x128xf32>
    %13 = arith.addf %10, %12 : vector<16x128xf32>
    %cst_11 = arith.constant 0.000000e+00 : f32
    %14 = vector.broadcast %cst_11 : f32 to vector<16x128xf32>
    %15 = arith.maximumf %13, %14 : vector<16x128xf32>
    %16 = arith.truncf %15 : vector<16x128xf32> to vector<16x128xbf16>
    %c0_12 = arith.constant 0 : index
    %c0_13 = arith.constant 0 : index
    %17 = vector.load %arg6[%c0_12, %c0_13] : memref<128x128xbf16, #tpu.memory_space<vmem>>, vector<128x128xbf16>
    %cst_14 = arith.constant dense<0.000000e+00> : vector<16x128xf32>
    %18 = tpu.matmul %16, %17, %cst_14 {dimension_numbers = #tpu.dot_dimension_numbers<[1], [0], [0], [1], [0, 0, 1, 1], [], []>} : vector<16x128xbf16>, vector<128x128xbf16>, vector<16x128xf32> -> vector<16x128xf32>
    %c0_15 = arith.constant 0 : index
    %c0_16 = arith.constant 0 : index
    %19 = vector.load %arg7[%c0_15, %c0_16] : memref<1x128xf32, #tpu.memory_space<vmem>>, vector<1x128xf32>
    %20 = vector.broadcast %19 : vector<1x128xf32> to vector<16x128xf32>
    %21 = arith.addf %18, %20 : vector<16x128xf32>
    %cst_17 = arith.constant 0.000000e+00 : f32
    %22 = vector.broadcast %cst_17 : f32 to vector<16x128xf32>
    %23 = arith.maximumf %21, %22 : vector<16x128xf32>
    %24 = arith.truncf %23 : vector<16x128xf32> to vector<16x128xbf16>
    %c0_18 = arith.constant 0 : index
    %c0_19 = arith.constant 0 : index
    %25 = vector.load %arg8[%c0_18, %c0_19] : memref<128x128xbf16, #tpu.memory_space<vmem>>, vector<128x128xbf16>
    %cst_20 = arith.constant dense<0.000000e+00> : vector<16x128xf32>
    %26 = tpu.matmul %24, %25, %cst_20 {dimension_numbers = #tpu.dot_dimension_numbers<[1], [0], [0], [1], [0, 0, 1, 1], [], []>} : vector<16x128xbf16>, vector<128x128xbf16>, vector<16x128xf32> -> vector<16x128xf32>
    %c0_21 = arith.constant 0 : index
    %c0_22 = arith.constant 0 : index
    %27 = vector.load %arg9[%c0_21, %c0_22] : memref<1x128xf32, #tpu.memory_space<vmem>>, vector<1x128xf32>
    %28 = vector.broadcast %27 : vector<1x128xf32> to vector<16x128xf32>
    %29 = arith.addf %26, %28 : vector<16x128xf32>
    %cst_23 = arith.constant 0.000000e+00 : f32
    %30 = vector.broadcast %cst_23 : f32 to vector<16x128xf32>
    %31 = arith.maximumf %29, %30 : vector<16x128xf32>
    %c0_24 = arith.constant 0 : index
    %c0_25 = arith.constant 0 : index
    %32 = vector.load %arg10[%c0_24, %c0_25] : memref<16x128xf32, #tpu.memory_space<vmem>>, vector<16x128xf32>
    tpu.vector_store %arg10[%c0_24, %c0_25], %31 {strides = array<i32>} : memref<16x128xf32, #tpu.memory_space<vmem>>, vector<16x128xf32>,
    return
  }
  func.func @transform_0(%arg0: i32) -> (i32, i32) {
    %c0_i32 = arith.constant 0 : i32
    %c0_i32_0 = arith.constant 0 : i32
    return %arg0, %c0_i32 : i32, i32
  }
  func.func @transform_1(%arg0: i32) -> (i32, i32) {
    %c0_i32 = arith.constant 0 : i32
    %c0_i32_0 = arith.constant 0 : i32
    %c0_i32_1 = arith.constant 0 : i32
    return %c0_i32, %c0_i32_0 : i32, i32
  }
  func.func @transform_2(%arg0: i32) -> (i32, i32) {
    %c0_i32 = arith.constant 0 : i32
    %c0_i32_0 = arith.constant 0 : i32
    %c0_i32_1 = arith.constant 0 : i32
    return %c0_i32, %c0_i32_0 : i32, i32
  }
  func.func @transform_3(%arg0: i32) -> (i32, i32) {
    %c0_i32 = arith.constant 0 : i32
    %c0_i32_0 = arith.constant 0 : i32
    %c0_i32_1 = arith.constant 0 : i32
    return %c0_i32, %c0_i32_0 : i32, i32
  }
  func.func @transform_4(%arg0: i32) -> (i32, i32) {
    %c0_i32 = arith.constant 0 : i32
    %c0_i32_0 = arith.constant 0 : i32
    %c0_i32_1 = arith.constant 0 : i32
    return %c0_i32, %c0_i32_0 : i32, i32
  }
  func.func @transform_5(%arg0: i32) -> (i32, i32) {
    %c0_i32 = arith.constant 0 : i32
    %c0_i32_0 = arith.constant 0 : i32
    %c0_i32_1 = arith.constant 0 : i32
    return %c0_i32, %c0_i32_0 : i32, i32
  }
  func.func @transform_6(%arg0: i32) -> (i32, i32) {
    %c0_i32 = arith.constant 0 : i32
    %c0_i32_0 = arith.constant 0 : i32
    %c0_i32_1 = arith.constant 0 : i32
    return %c0_i32, %c0_i32_0 : i32, i32
  }
  func.func @transform_7(%arg0: i32) -> (i32, i32) {
    %c0_i32 = arith.constant 0 : i32
    %c0_i32_0 = arith.constant 0 : i32
    %c0_i32_1 = arith.constant 0 : i32
    return %c0_i32, %c0_i32_0 : i32, i32
  }
  func.func @transform_8(%arg0: i32) -> (i32, i32) {
    %c0_i32 = arith.constant 0 : i32
    %c0_i32_0 = arith.constant 0 : i32
    %c0_i32_1 = arith.constant 0 : i32
    return %c0_i32, %c0_i32_0 : i32, i32
  }
  func.func @transform_9(%arg0: i32) -> (i32, i32) {
    %c0_i32 = arith.constant 0 : i32
    %c0_i32_0 = arith.constant 0 : i32
    return %arg0, %c0_i32 : i32, i32
  }
}

</mosaic_0001>

<bundles_post_ra>
// kernel: tpu_custom_call.1
= control target key start
LH: loop header
LB: loop body
LE: loop exit
PB: predicated region body
PF: predicated region fallthrough
CT: control target
= control target key end

     0   :  { %14 = vsyncpa [#allocation3], 0  ;;  %s902_s0 = inlined_call_operand.hbm [shape: bf16[16,128], index: 0, kind: input, shape index: {}]   ;;  %s903_s1 = inlined_call_operand.hbm [shape: bf16[128,128], index: 1, kind: input, shape index: {}]   ;;  %s904_s2 = inlined_call_operand.vmem [shape: f32[1,128], index: 2, kind: input, shape index: {}]   ;;  %s905_s3 = inlined_call_operand.hbm [shape: bf16[128,128], index: 3, kind: input, shape index: {}]   ;;  %s906_s4 = inlined_call_operand.vmem [shape: f32[1,128], index: 4, kind: input, shape index: {}]   ;;  %s907_s5 = inlined_call_operand.hbm [shape: bf16[128,128], index: 5, kind: input, shape index: {}]   ;;  %s908_s6 = inlined_call_operand.vmem [shape: f32[1,128], index: 6, kind: input, shape index: {}]   ;;  %s909_s7 = inlined_call_operand.hbm [shape: bf16[128,128], index: 7, kind: input, shape index: {}]   ;;  %s910_s8 = inlined_call_operand.vmem [shape: f32[1,128], index: 8, kind: input, shape index: {}]   ;;  %s911_s9 = inlined_call_operand.hbm [shape: f32[16,128], index: 9, kind: output, shape index: {}]  }
   0x1   :  { %15 = vsyncpa [#allocation6], 0 }
   0x2   :  { %16 = vsyncpa [#allocation9], 0 }
   0x3   :  { %17 = vsyncpa [#allocation4], 0  ;;  %s35_s11 = sshll.u32 %s903_s1, 4  ;;  %s812_s12 = smov [#allocation5]   ;;  %s36_s11 = int_to_ptr.hbm [resolvable:$true] %s35_s11 }
   0x4   :  { %s37_s13 = sshll.u32 %s812_s12, 4  ;;  %s65_s16 = sshll.u32 %s907_s5, 4  ;;  %s38_s13 = int_to_ptr.vmem [resolvable:$true] %s37_s13  ;;  %s66_s16 = int_to_ptr.hbm [resolvable:$true] %s65_s16 }
   0x5   :  { %s813_s17 = smov 64   ;;  %s814_s18 = smov 4  }
   0x6   :  { %43 = dma.hbm_to_vmem [thread:$0]  %s36_s11, 1024, %s38_s13, [#allocation6], %s813_s17, %s813_s17, %s814_s18  }
   0x7   :  { %s815_s19 = smov [#allocation8]   ;;  %s22_s23 = sshll.u32 %s902_s0, 4  ;;  %s23_s23 = int_to_ptr.hbm [resolvable:$true] %s22_s23 }
   0x8   :  { %s67_s20 = sshll.u32 %s815_s19, 4  ;;  %s50_s25 = sshll.u32 %s905_s3, 4  ;;  %s68_s20 = int_to_ptr.vmem [resolvable:$true] %s67_s20  ;;  %s51_s25 = int_to_ptr.hbm [resolvable:$true] %s50_s25 }
   0x9   :  { %73 = dma.hbm_to_vmem [thread:$0]  %s66_s16, 1024, %s68_s20, [#allocation9], %s813_s17, %s813_s17, %s814_s18  }
   0xa   :  { %s816_s26 = smov [#allocation2]   ;;  %s817_s5 = smov [#allocation7]  }
   0xb   :  { %s24_s27 = sshll.u32 %s816_s26, 4  ;;  %s52_s28 = sshll.u32 %s817_s5, 4  ;;  %s25_s27 = int_to_ptr.vmem [resolvable:$true] %s24_s27  ;;  %s53_s28 = int_to_ptr.vmem [resolvable:$true] %s52_s28 }
   0xc   :  { %30 = dma.hbm_to_vmem [thread:$0]  %s23_s23, 128, %s25_s27, [#allocation3], %s813_s17, %s813_s17, %s814_s18  }
   0xd   :  { %s80_s10 = sshll.u32 %s909_s7, 4  ;;  %s818_s0 = smov [#allocation10]   ;;  %s81_s10 = int_to_ptr.hbm [resolvable:$true] %s80_s10 }
   0xe   :  { %58 = dma.hbm_to_vmem [thread:$0]  %s51_s25, 1024, %s53_s28, [#allocation6], %s813_s17, %s813_s17, %s814_s18  }
   0xf   :  { %s82_s11 = sshll.u32 %s818_s0, 4  ;;  %s83_s11 = int_to_ptr.vmem [resolvable:$true] %s82_s11 }
  0x10   :  { %88 = dma.hbm_to_vmem [thread:$0]  %s81_s10, 1024, %s83_s11, [#allocation9], %s813_s17, %s813_s17, %s814_s18  }
  0x11   :  { %804 = dma.done.wait [#allocation3], 128  }
  0x12   :  { %805 = vsyncadd [#allocation3], 4294967168 }
  0x13   :  { %806 = dma.done.wait [#allocation6], 2048  }
  0x14   :  { %807 = vsyncadd [#allocation6], 4294965248 }
  0x15   :  { %808 = dma.done.wait [#allocation9], 2048  }
  0x16   :  { %809 = vsyncadd [#allocation9], 4294965248  ;;  %v621_v0 = vld [vmem:[#allocation5 + $0x38] sm:$0xff]  ;;  %v620_v1 = vld [vmem:[#allocation5 + $0x30] sm:$0xff]  ;;  %s819_s16 = smov [#allocation11]   ;;  %s820_s20 = smov 128  }
  0x17   :  { %187 = vmatpush.bf16.msra.mxu0 %v621_v0  ;;  %v629_v2 = vld [vmem:[#allocation7 + $0x38] sm:$0xff]  ;;  %v628_v3 = vld [vmem:[#allocation7 + $0x30] sm:$0xff]  ;;  %v619_v4 = vld [vmem:[#allocation5 + $0x28] sm:$0xff]  ;;  %s464_s17 = sshll.u32 %s819_s16, 4  ;;  %s821_s21 = smov 8   ;;  %s465_s17 = int_to_ptr.vmem [resolvable:$true] %s464_s17 }
  0x18   :  { %272 = vmatpush.bf16.msra.mxu1 %v629_v2  ;;  %v627_v5 = vld [vmem:[#allocation7 + $0x28] sm:$0xff]  ;;  %v618_v6 = vld [vmem:[#allocation5 + $0x20] sm:$0xff]  ;;  %v617_v8 = vld [vmem:[#allocation5 + $0x18] sm:$0xff] }
  0x19   :  { %v626_v7 = vld [vmem:[#allocation7 + $0x20] sm:$0xff]  ;;  %v616_v9 = vld [vmem:[#allocation5 + $0x10] sm:$0xff]  ;;  %v615_v10 = vld [vmem:[#allocation5 + $0x8] sm:$0xff] }
  0x1a   :  { %v614_v11 = vld [vmem:[#allocation5] sm:$0xff]  ;;  %v613_v12 = vld [vmem:[#allocation2] sm:$0xff]  ;;  %v624_v14 = vld [vmem:[#allocation7 + $0x10] sm:$0xff] }
  0x1b   :  { %188 = vmatpush.bf16.msra.mxu0 %v620_v1  ;;  %v625_v13 = vld [vmem:[#allocation7 + $0x18] sm:$0xff]  ;;  %v623_v15 = vld [vmem:[#allocation7 + $0x8] sm:$0xff]  ;;  %v622_v16 = vld [vmem:[#allocation7] sm:$0xff] }
  0x1c   :  { %273 = vmatpush.bf16.msra.mxu1 %v628_v3  ;;  %v637_v17 = vld [vmem:[#allocation8 + $0x38] sm:$0xff]  ;;  %v636_v18 = vld [vmem:[#allocation8 + $0x30] sm:$0xff]  ;;  %v635_v19 = vld [vmem:[#allocation8 + $0x28] sm:$0xff] }
  0x1d   :  { %357 = vmatpush.bf16.msra.mxu2 %v637_v17  ;;  %v634_v20 = vld [vmem:[#allocation8 + $0x20] sm:$0xff]  ;;  %v656_v22 = vld [vmem:[%s904_s2] ss:$0 sm:$0xff]  ;;  %v632_v30 = vld [vmem:[#allocation8 + $0x10] sm:$0xff] }
  0x1e   :  { %v633_v29 = vld [vmem:[#allocation8 + $0x18] sm:$0xff]  ;;  %v631_v31 = vld [vmem:[#allocation8 + $0x8] sm:$0xff]  ;;  %v630_v32 = vld [vmem:[#allocation8] sm:$0xff] }
  0x1f   :  { %189 = vmatpush.bf16.msra.mxu0 %v619_v4  ;;  %v645_v33 = vld [vmem:[#allocation10 + $0x38] sm:$0xff]  ;;  %v644_v34 = vld [vmem:[#allocation10 + $0x30] sm:$0xff]  ;;  %v643_v35 = vld [vmem:[#allocation10 + $0x28] sm:$0xff] }
  0x20   :  { %274 = vmatpush.bf16.msra.mxu1 %v627_v5  ;;  %442 = vmatpush.bf16.msra.mxu3 %v645_v33  ;;  %v642_v36 = vld [vmem:[#allocation10 + $0x20] sm:$0xff]  ;;  %v657_v38 = vld [vmem:[%s906_s4] ss:$0 sm:$0xff]  ;;  %v640_v46 = vld [vmem:[#allocation10 + $0x10] sm:$0xff] }
  0x21   :  { %358 = vmatpush.bf16.msra.mxu2 %v636_v18  ;;  %v641_v45 = vld [vmem:[#allocation10 + $0x18] sm:$0xff]  ;;  %v639_v47 = vld [vmem:[#allocation10 + $0x8] sm:$0xff]  ;;  %v638_v48 = vld [vmem:[#allocation10] sm:$0xff] }
  0x22   :  { %v658_v50 = vld [vmem:[%s908_s6] ss:$0 sm:$0xff]  ;;  %s466_s6 = sshll.u32 %s911_s9, 4  ;;  %s467_s6 = int_to_ptr.hbm [resolvable:$true] %s466_s6 }
  0x23   :  { %190 = vmatpush.bf16.msra.mxu0 %v618_v6  ;;  %v659_v57 = vld [vmem:[%s910_s8] ss:$0 sm:$0xff] }
  0x24   :  { %275 = vmatpush.bf16.msra.mxu1 %v626_v7  ;;  %443 = vmatpush.bf16.msra.mxu3 %v644_v34 }
  0x25   :  { %359 = vmatpush.bf16.msra.mxu2 %v635_v19 }
  0x27   :  { %191 = vmatpush.bf16.msra.mxu0 %v617_v8 }
  0x28   :  { %276 = vmatpush.bf16.msra.mxu1 %v625_v13  ;;  %444 = vmatpush.bf16.msra.mxu3 %v643_v35 }
  0x29   :  { %360 = vmatpush.bf16.msra.mxu2 %v634_v20 }
  0x2b   :  { %192 = vmatpush.bf16.msra.mxu0 %v616_v9 }
  0x2c   :  { %277 = vmatpush.bf16.msra.mxu1 %v624_v14  ;;  %445 = vmatpush.bf16.msra.mxu3 %v642_v36 }
  0x2d   :  { %361 = vmatpush.bf16.msra.mxu2 %v633_v29 }
  0x2f   :  { %193 = vmatpush.bf16.msra.mxu0 %v615_v10 }
  0x30   :  { %278 = vmatpush.bf16.msra.mxu1 %v623_v15  ;;  %446 = vmatpush.bf16.msra.mxu3 %v641_v45 }
  0x31   :  { %362 = vmatpush.bf16.msra.mxu2 %v632_v30 }
  0x33   :  { %194 = vmatpush.bf16.msra.mxu0 %v614_v11 }
  0x34   :  { %279 = vmatpush.bf16.msra.mxu1 %v622_v16  ;;  %447 = vmatpush.bf16.msra.mxu3 %v640_v46 }
  0x35   :  { %363 = vmatpush.bf16.msra.mxu2 %v631_v31 }
  0x36   :  { %195 = vmatmul.bf16.vlgmr.msra.gmra.mxu0 %v613_v12 }
  0x38   :  { %448 = vmatpush.bf16.msra.mxu3 %v639_v47 }
  0x39   :  { %364 = vmatpush.bf16.msra.mxu2 %v630_v32 }
  0x3c   :  { %449 = vmatpush.bf16.msra.mxu3 %v638_v48 }
  0xb3   :  { %v196_v21 = vpop.f32.mrf.mxu0 }
  0xb4   :  { %v197_v23 = vadd.f32 %v656_v22, %v196_v21 }
  0xb6   :  { %v201_v26 = vmax.f32 %v197_v23, 0.0 }
  0xbb   :  { %v198_v24 = vpop.f32.mrf.mxu0 }
  0xbc   :  { %v199_v25 = vadd.f32 %v656_v22, %v198_v24 }
  0xbe   :  { %v202_v27 = vmax.f32 %v199_v25, 0.0 }
  0xc0   :  { %v203_v28 = vpack.c.bf16 %v202_v27, %v201_v26 }
  0xc2   :  { %280 = vmatmul.bf16.vlgmr.msra.gmra.mxu1 %v203_v28 }
 0x13f   :  { %v281_v37 = vpop.f32.mrf.mxu1 }
 0x140   :  { %v282_v39 = vadd.f32 %v657_v38, %v281_v37 }
 0x142   :  { %v286_v42 = vmax.f32 %v282_v39, 0.0 }
 0x147   :  { %v283_v40 = vpop.f32.mrf.mxu1 }
 0x148   :  { %v284_v41 = vadd.f32 %v657_v38, %v283_v40 }
 0x14a   :  { %v287_v43 = vmax.f32 %v284_v41, 0.0 }
 0x14c   :  { %v288_v44 = vpack.c.bf16 %v287_v43, %v286_v42 }
 0x14e   :  { %365 = vmatmul.bf16.vlgmr.msra.gmra.mxu2 %v288_v44 }
 0x1d1   :  { %v366_v49 = vpop.f32.mrf.mxu2 }
 0x1d2   :  { %v367_v51 = vadd.f32 %v658_v50, %v366_v49 }
 0x1d4   :  { %v371_v54 = vmax.f32 %v367_v51, 0.0 }
 0x1d9   :  { %v368_v52 = vpop.f32.mrf.mxu2 }
 0x1da   :  { %v369_v53 = vadd.f32 %v658_v50, %v368_v52 }
 0x1dc   :  { %v372_v55 = vmax.f32 %v369_v53, 0.0 }
 0x1de   :  { %v373_v56 = vpack.c.bf16 %v372_v55, %v371_v54 }
 0x1e0   :  { %450 = vmatmul.bf16.vlgmr.msra.gmra.mxu3 %v373_v56 }
 0x263   :  { %v451_v58 = vpop.f32.mrf.mxu3 }
 0x264   :  { %v452_v59 = vadd.f32 %v659_v57, %v451_v58 }
 0x266   :  { %v456_v60 = vmax.f32 %v452_v59, 0.0 }
 0x268   :  { %458 = vst [vmem:[#allocation11] sm:$0xff] %v456_v60 }
 0x26b   :  { %v453_v61 = vpop.f32.mrf.mxu3 }
 0x26c   :  { %v454_v62 = vadd.f32 %v659_v57, %v453_v61 }
 0x26e   :  { %v457_v63 = vmax.f32 %v454_v62, 0.0 }
 0x270   :  { %459 = vst [vmem:[#allocation11 + $0x8] sm:$0xff] %v457_v63 }
 0x271   :  { %472 = dma.vmem_to_hbm [thread:$0]  %s465_s17, 256, %s467_s6, [#allocation4], %s820_s20, %s820_s20, %s821_s21  }
 0x272   :  { %810 = dma.done.wait [#allocation4], 256  }
 0x273   :  { %811 = vsyncadd [#allocation4], 4294967040 }
 0x274   :  { %477 = vsyncpa [#allocation3], 1 }
 0x275   :  { %478 = vsyncpa [#allocation6], 1 }
 0x276   :  { %479 = vsyncpa [#allocation9], 1 }
 0x277   :  { %480 = vsyncpa [#allocation4], 1 }

</bundles_post_ra>
